<compile_context>
chip_gen: v6e
topology: v6e:2x2x1
jax: 0.10.0
libtpu: 0.0.40
codegen_flags: <defaults>
</compile_context>

<pallas_src>
import functools

import jax
import jax.numpy as jnp
import numpy as np
from jax.experimental import pallas as pl
from jax.experimental.pallas import tpu as pltpu

EPS = 1e-5


# --------------------------------- kernel -----------------------------------

def _fused_residual_kernel(x_ref, edge_ref, w1c_ref, w2_ref, b3_ref,
                           g1_ref, be1_ref, g2_ref, be2_ref, o_ref, *, cmid):
    """Whole forward in one VMEM-resident invocation.

    x_ref:   (Cp, N*L)  f32   channel-major input, batch packed on lanes
    edge_ref:(2,  N*L)  f32   row 0: l-1 valid, row 1: l+1 valid (per element)
    w1c_ref: (2*Cm, 3*Cp) bf16  conv1 taps stacked with the 1x1 shortcut
    w2_ref:  (Cm, 3*Cm)   bf16  conv2 taps
    b3/g*/be*: (Cm, 1)    f32
    o_ref:   (Cm, N*L)    f32
    """
    NL = x_ref.shape[-1]
    inv_cnt = 1.0 / NL                      # BN count over (N, L)

    # Hoisted boundary masks (built once in the wrapper, loaded once here).
    lm = edge_ref[0:1, :]
    rm = edge_ref[1:2, :]

    def taps(h):
        # im2col slab (3*C, NL): rows [h[l-1] | h[l] | h[l+1]], zeroed outside
        # each packed batch element's own length-L window. roll is XLU (free
        # slot); masking is one broadcast multiply per tap.
        left = pltpu.roll(h, shift=1, axis=1) * lm
        right = pltpu.roll(h, shift=h.shape[-1] - 1, axis=1) * rm
        return jnp.concatenate([left, h, right], axis=0).astype(jnp.bfloat16)

    def bn(y, g, be):
        # training-mode BatchNorm with global batch stats (all data resident)
        mean = jnp.sum(y, axis=1, keepdims=True) * inv_cnt
        d = y - mean
        var = jnp.sum(d * d, axis=1, keepdims=True) * inv_cnt
        scale = g * jax.lax.rsqrt(var + EPS)
        return y * scale + (be - mean * scale)

    x = x_ref[...]

    # conv1 and the 1x1 shortcut share one MXU matmul (shortcut rows are
    # non-zero only in the center-tap columns). conv biases b1/b2 are omitted:
    # training-mode BN absorbs any per-channel shift.
    y1s = jax.lax.dot_general(
        w1c_ref[...], taps(x),
        dimension_numbers=(((1,), (0,)), ((), ())),
        preferred_element_type=jnp.float32)
    y1 = y1s[:cmid]
    short = y1s[cmid:] + b3_ref[...]

    h = jnp.maximum(bn(y1, g1_ref[...], be1_ref[...]), 0.0)

    y2 = jax.lax.dot_general(
        w2_ref[...], taps(h),
        dimension_numbers=(((1,), (0,)), ((), ())),
        preferred_element_type=jnp.float32)

    o_ref[...] = jnp.maximum(bn(y2, g2_ref[...], be2_ref[...]) + short, 0.0)


# --------------------------------- wrapper ----------------------------------

def residual_pallas(x_ncl, params):
    """x_ncl: (N, Cin, L) like the PyTorch module input; returns (N, Cmid, L)."""
    W1, b1, W2, b2, W3, b3, g1, be1, g2, be2 = params
    del b1, b2  # conv bias immediately followed by training-mode BN is a no-op
    N, Cin, L = x_ncl.shape
    Cmid = W1.shape[0]
    f32 = jnp.float32
    pad8 = lambda c: -(-c // 8) * 8
    Cp, Cm = pad8(Cin), pad8(Cmid)
    NL = N * L

    # Channel-major with the whole batch packed along the lane axis: (Cp, N*L).
    x_cm = jnp.transpose(x_ncl.astype(f32), (1, 0, 2)).reshape(Cin, NL)
    x_cm = jnp.pad(x_cm, ((0, Cp - Cin), (0, 0)))

    # Boundary-validity masks for the l-1 / l+1 taps (trace-time constants).
    lane = np.arange(NL) % L
    edge = jnp.asarray(
        np.stack([(lane >= 1), (lane <= L - 2)]).astype(np.float32))  # (2, NL)

    def tap_mat(W, co_p, ci_p):
        # W == 1 input with padding=1 -> only kw == 1 of each 3x3 weight
        # matters; taps laid out [l-1 | l | l+1] to match the im2col slab.
        co, ci = W.shape[0], W.shape[1]
        taps = [jnp.pad(W[:, :, k, 1].astype(f32),
                        ((0, co_p - co), (0, ci_p - ci))) for k in range(3)]
        return jnp.concatenate(taps, axis=1)

    w1m = tap_mat(W1, Cm, Cp)                               # (Cm, 3*Cp)
    w2m = tap_mat(W2, Cm, Cm).astype(jnp.bfloat16)          # (Cm, 3*Cm)
    # 1x1 shortcut stacked under conv1 (center-tap columns only).
    w3c = jnp.pad(W3[:, :, 0, 0].astype(f32), ((0, Cm - Cmid), (0, Cp - Cin)))
    zeros = jnp.zeros((Cm, Cp), f32)
    w1c = jnp.concatenate(
        [w1m, jnp.concatenate([zeros, w3c, zeros], axis=1)],
        axis=0).astype(jnp.bfloat16)                        # (2*Cm, 3*Cp)

    def col(v):
        return jnp.pad(v.astype(f32), (0, Cm - v.shape[0])).reshape(Cm, 1)

    # Whole batch stays VMEM-resident -> no HBM round trips of y1/y2/shortcut.
    # Budgeted conservatively so it also fits v7x's 64 MiB/TC VMEM.
    # TODO(synk): add an L/batch-tiled multi-sweep fallback for large N*L.
    resident_bytes = NL * (4 * Cp + 2 * 3 * Cp + 4 * 5 * Cm + 2 * 3 * Cm)
    assert resident_bytes < 24 * 1024 * 1024, \
        "batch too large for the VMEM-resident fused kernel"

    full = lambda i: (0, 0)
    out_cm = pl.pallas_call(
        functools.partial(_fused_residual_kernel, cmid=Cm),
        grid=(1,),
        in_specs=[pl.BlockSpec((Cp, NL), full),
                  pl.BlockSpec((2, NL), full),
                  pl.BlockSpec((2 * Cm, 3 * Cp), full),
                  pl.BlockSpec((Cm, 3 * Cm), full),
                  pl.BlockSpec((Cm, 1), full),
                  pl.BlockSpec((Cm, 1), full),
                  pl.BlockSpec((Cm, 1), full),
                  pl.BlockSpec((Cm, 1), full),
                  pl.BlockSpec((Cm, 1), full)],
        out_specs=pl.BlockSpec((Cm, NL), full),
        out_shape=jax.ShapeDtypeStruct((Cm, NL), f32),
        compiler_params=pltpu.CompilerParams(
            dimension_semantics=("arbitrary",)),
        cost_estimate=pl.CostEstimate(
            flops=2 * NL * (2 * Cm * 3 * Cp + Cm * 3 * Cm),
            transcendentals=2 * Cm,
            bytes_accessed=4 * NL * (Cp + Cm)),
    )(x_cm, edge, w1c, w2m, col(b3), col(g1), col(be1), col(g2), col(be2))

    return out_cm[:Cmid].reshape(Cmid, N, L).transpose(1, 0, 2)


# -------------------------------- reference ----------------------------------

def residual_ref(x_ncl, torch_params):
    """Pure-JAX reference replicating the PyTorch forward (NCHW convs, W=1)."""
    W1, b1, W2, b2, W3, b3, g1, be1, g2, be2 = torch_params
    X = x_ncl[:, :, :, None]  # unsqueeze(3) -> NCHW with W == 1

    def conv(inp, W, b, pad):
        out = jax.lax.conv_general_dilated(
            inp, W, window_strides=(1, 1),
            padding=[(pad, pad), (pad, pad)],
            dimension_numbers=('NCHW', 'OIHW', 'NCHW'),
            precision=jax.lax.Precision.HIGHEST)
        return out + b[None, :, None, None]

    def bn(Y, g, be):
        mean = jnp.mean(Y, axis=(0, 2, 3), keepdims=True)
        var = jnp.mean((Y - mean) ** 2, axis=(0, 2, 3), keepdims=True)
        return ((Y - mean) * jax.lax.rsqrt(var + EPS) * g[None, :, None, None]
                + be[None, :, None, None])

    Y = jax.nn.relu(bn(conv(X, W1, b1, 1), g1, be1))
    Y = bn(conv(Y, W2, b2, 1), g2, be2)
    Xs = conv(X, W3, b3, 0)
    return jnp.squeeze(jax.nn.relu(Y + Xs), axis=3)


if __name__ == "__main__":
    # Residual(input_channels=4, num_channels=8, use_1x1conv=True, strides=1)
    N, Cin, Cmid, L = 2, 4, 8, 128
    key = jax.random.PRNGKey(0)
    ks = jax.random.split(key, 12)
    x = jax.random.normal(ks[0], (N, Cin, L), jnp.float32)
    W1 = 0.2 * jax.random.normal(ks[1], (Cmid, Cin, 3, 3), jnp.float32)
    b1 = 0.1 * jax.random.normal(ks[2], (Cmid,), jnp.float32)
    W2 = 0.2 * jax.random.normal(ks[3], (Cmid, Cmid, 3, 3), jnp.float32)
    b2 = 0.1 * jax.random.normal(ks[4], (Cmid,), jnp.float32)
    W3 = 0.2 * jax.random.normal(ks[5], (Cmid, Cin, 1, 1), jnp.float32)
    b3 = 0.1 * jax.random.normal(ks[6], (Cmid,), jnp.float32)
    g1 = 1.0 + 0.1 * jax.random.normal(ks[7], (Cmid,), jnp.float32)
    be1 = 0.1 * jax.random.normal(ks[8], (Cmid,), jnp.float32)
    g2 = 1.0 + 0.1 * jax.random.normal(ks[9], (Cmid,), jnp.float32)
    be2 = 0.1 * jax.random.normal(ks[10], (Cmid,), jnp.float32)
    params = (W1, b1, W2, b2, W3, b3, g1, be1, g2, be2)

    fwd = jax.jit(residual_pallas)
    out = jax.block_until_ready(fwd(x, params))
    ref = residual_ref(x, params)
    # bf16 MXU inputs (f32 accumulate) vs. f32 HIGHEST reference -> 2e-2 tol.
    np.testing.assert_allclose(np.asarray(out), np.asarray(ref),
                               atol=2e-2, rtol=2e-2)
    print("KERNEL_OK")
</pallas_src>

<mosaic_0001>
module attributes {stable_mosaic.version = 11 : i64} {
  func.func @_fused_residual_kernel(%arg0: i32, %arg1: memref<8x256xf32, #tpu.memory_space<vmem>>, %arg2: memref<2x256xf32, #tpu.memory_space<vmem>>, %arg3: memref<16x24xbf16, #tpu.memory_space<vmem>>, %arg4: memref<8x24xbf16, #tpu.memory_space<vmem>>, %arg5: memref<8x1xf32, #tpu.memory_space<vmem>>, %arg6: memref<8x1xf32, #tpu.memory_space<vmem>>, %arg7: memref<8x1xf32, #tpu.memory_space<vmem>>, %arg8: memref<8x1xf32, #tpu.memory_space<vmem>>, %arg9: memref<8x1xf32, #tpu.memory_space<vmem>>, %arg10: memref<8x256xf32, #tpu.memory_space<vmem>>) attributes {dimension_semantics = [#tpu.dimension_semantics<arbitrary>], iteration_bounds = array<i64: 1>, scalar_prefetch = 0 : i64, scratch_operands = 0 : i64, tpu.core_type = #tpu.core_type<tc>, window_params = [{pipeline_mode = #tpu.pipeline_mode<synchronous>, transform_indices = @transform_0, window_bounds = array<i64: 8, 256>}, {pipeline_mode = #tpu.pipeline_mode<synchronous>, transform_indices = @transform_1, window_bounds = array<i64: 2, 256>}, {pipeline_mode = #tpu.pipeline_mode<synchronous>, transform_indices = @transform_2, window_bounds = array<i64: 16, 24>}, {pipeline_mode = #tpu.pipeline_mode<synchronous>, transform_indices = @transform_3, window_bounds = array<i64: 8, 24>}, {pipeline_mode = #tpu.pipeline_mode<synchronous>, transform_indices = @transform_4, window_bounds = array<i64: 8, 1>}, {pipeline_mode = #tpu.pipeline_mode<synchronous>, transform_indices = @transform_5, window_bounds = array<i64: 8, 1>}, {pipeline_mode = #tpu.pipeline_mode<synchronous>, transform_indices = @transform_6, window_bounds = array<i64: 8, 1>}, {pipeline_mode = #tpu.pipeline_mode<synchronous>, transform_indices = @transform_7, window_bounds = array<i64: 8, 1>}, {pipeline_mode = #tpu.pipeline_mode<synchronous>, transform_indices = @transform_8, window_bounds = array<i64: 8, 1>}, {pipeline_mode = #tpu.pipeline_mode<synchronous>, transform_indices = @transform_9, window_bounds = array<i64: 8, 256>}]} {
    %c0 = arith.constant 0 : index
    %c0_0 = arith.constant 0 : index
    %0 = vector.load %arg2[%c0, %c0_0] : memref<2x256xf32, #tpu.memory_space<vmem>>, vector<1x256xf32>
    %c1 = arith.constant 1 : index
    %c0_1 = arith.constant 0 : index
    %1 = vector.load %arg2[%c1, %c0_1] : memref<2x256xf32, #tpu.memory_space<vmem>>, vector<1x256xf32>
    %c0_2 = arith.constant 0 : index
    %c0_3 = arith.constant 0 : index
    %2 = vector.load %arg1[%c0_2, %c0_3] : memref<8x256xf32, #tpu.memory_space<vmem>>, vector<8x256xf32>
    %c0_4 = arith.constant 0 : index
    %c0_5 = arith.constant 0 : index
    %3 = vector.load %arg3[%c0_4, %c0_5] : memref<16x24xbf16, #tpu.memory_space<vmem>>, vector<16x24xbf16>
    %c1_i32 = arith.constant 1 : i32
    %4 = tpu.dynamic_rotate %2 by %c1_i32 dim 1 : vector<8x256xf32>, i32 -> vector<8x256xf32>
    %5 = vector.broadcast %0 : vector<1x256xf32> to vector<8x256xf32>
    %6 = arith.mulf %4, %5 : vector<8x256xf32>
    %c255_i32 = arith.constant 255 : i32
    %7 = tpu.dynamic_rotate %2 by %c255_i32 dim 1 : vector<8x256xf32>, i32 -> vector<8x256xf32>
    %8 = vector.broadcast %1 : vector<1x256xf32> to vector<8x256xf32>
    %9 = arith.mulf %7, %8 : vector<8x256xf32>
    %10 = tpu.concatenate %6, %2, %9 in 0 : vector<8x256xf32>, vector<8x256xf32>, vector<8x256xf32> -> vector<24x256xf32>
    %11 = arith.truncf %10 : vector<24x256xf32> to vector<24x256xbf16>
    %cst = arith.constant dense<0.000000e+00> : vector<16x256xf32>
    %12 = tpu.matmul %3, %11, %cst {dimension_numbers = #tpu.dot_dimension_numbers<[1], [0], [0], [1], [0, 0, 1, 1], [], []>} : vector<16x24xbf16>, vector<24x256xbf16>, vector<16x256xf32> -> vector<16x256xf32>
    %13 = vector.extract_strided_slice %12 {offsets = [0, 0], sizes = [8, 256], strides = [1, 1]} : vector<16x256xf32> to vector<8x256xf32>
    %14 = vector.extract_strided_slice %12 {offsets = [8, 0], sizes = [8, 256], strides = [1, 1]} : vector<16x256xf32> to vector<8x256xf32>
    %c0_6 = arith.constant 0 : index
    %c0_7 = arith.constant 0 : index
    %15 = vector.load %arg5[%c0_6, %c0_7] : memref<8x1xf32, #tpu.memory_space<vmem>>, vector<8x1xf32>
    %16 = vector.broadcast %15 : vector<8x1xf32> to vector<8x256xf32>
    %17 = arith.addf %14, %16 : vector<8x256xf32>
    %c0_8 = arith.constant 0 : index
    %c0_9 = arith.constant 0 : index
    %18 = vector.load %arg6[%c0_8, %c0_9] : memref<8x1xf32, #tpu.memory_space<vmem>>, vector<8x1xf32>
    %c0_10 = arith.constant 0 : index
    %c0_11 = arith.constant 0 : index
    %19 = vector.load %arg7[%c0_10, %c0_11] : memref<8x1xf32, #tpu.memory_space<vmem>>, vector<8x1xf32>
    %cst_12 = arith.constant dense<0.000000e+00> : vector<8xf32>
    %20 = vector.multi_reduction <add>, %13, %cst_12 [1] : vector<8x256xf32> to vector<8xf32>
    %21 = vector.shape_cast %20 : vector<8xf32> to vector<8x1xf32>
    %cst_13 = arith.constant 3.906250e-03 : f32
    %22 = vector.broadcast %cst_13 : f32 to vector<8x1xf32>
    %23 = arith.mulf %21, %22 : vector<8x1xf32>
    %24 = vector.broadcast %23 : vector<8x1xf32> to vector<8x256xf32>
    %25 = arith.subf %13, %24 : vector<8x256xf32>
    %26 = arith.mulf %25, %25 : vector<8x256xf32>
    %cst_14 = arith.constant dense<0.000000e+00> : vector<8xf32>
    %27 = vector.multi_reduction <add>, %26, %cst_14 [1] : vector<8x256xf32> to vector<8xf32>
    %28 = vector.shape_cast %27 : vector<8xf32> to vector<8x1xf32>
    %cst_15 = arith.constant 3.906250e-03 : f32
    %29 = vector.broadcast %cst_15 : f32 to vector<8x1xf32>
    %30 = arith.mulf %28, %29 : vector<8x1xf32>
    %cst_16 = arith.constant 9.99999974E-6 : f32
    %31 = vector.broadcast %cst_16 : f32 to vector<8x1xf32>
    %32 = arith.addf %30, %31 : vector<8x1xf32>
    %33 = math.rsqrt %32 : vector<8x1xf32>
    %34 = arith.mulf %18, %33 : vector<8x1xf32>
    %35 = vector.broadcast %34 : vector<8x1xf32> to vector<8x256xf32>
    %36 = arith.mulf %13, %35 : vector<8x256xf32>
    %37 = arith.mulf %23, %34 : vector<8x1xf32>
    %38 = arith.subf %19, %37 : vector<8x1xf32>
    %39 = vector.broadcast %38 : vector<8x1xf32> to vector<8x256xf32>
    %40 = arith.addf %36, %39 : vector<8x256xf32>
    %cst_17 = arith.constant 0.000000e+00 : f32
    %41 = vector.broadcast %cst_17 : f32 to vector<8x256xf32>
    %42 = arith.maximumf %40, %41 : vector<8x256xf32>
    %c0_18 = arith.constant 0 : index
    %c0_19 = arith.constant 0 : index
    %43 = vector.load %arg4[%c0_18, %c0_19] : memref<8x24xbf16, #tpu.memory_space<vmem>>, vector<8x24xbf16>
    %c1_i32_20 = arith.constant 1 : i32
    %44 = tpu.dynamic_rotate %42 by %c1_i32_20 dim 1 : vector<8x256xf32>, i32 -> vector<8x256xf32>
    %45 = vector.broadcast %0 : vector<1x256xf32> to vector<8x256xf32>
    %46 = arith.mulf %44, %45 : vector<8x256xf32>
    %c255_i32_21 = arith.constant 255 : i32
    %47 = tpu.dynamic_rotate %42 by %c255_i32_21 dim 1 : vector<8x256xf32>, i32 -> vector<8x256xf32>
    %48 = vector.broadcast %1 : vector<1x256xf32> to vector<8x256xf32>
    %49 = arith.mulf %47, %48 : vector<8x256xf32>
    %50 = tpu.concatenate %46, %42, %49 in 0 : vector<8x256xf32>, vector<8x256xf32>, vector<8x256xf32> -> vector<24x256xf32>
    %51 = arith.truncf %50 : vector<24x256xf32> to vector<24x256xbf16>
    %cst_22 = arith.constant dense<0.000000e+00> : vector<8x256xf32>
    %52 = tpu.matmul %43, %51, %cst_22 {dimension_numbers = #tpu.dot_dimension_numbers<[1], [0], [0], [1], [0, 0, 1, 1], [], []>} : vector<8x24xbf16>, vector<24x256xbf16>, vector<8x256xf32> -> vector<8x256xf32>
    %c0_23 = arith.constant 0 : index
    %c0_24 = arith.constant 0 : index
    %53 = vector.load %arg8[%c0_23, %c0_24] : memref<8x1xf32, #tpu.memory_space<vmem>>, vector<8x1xf32>
    %c0_25 = arith.constant 0 : index
    %c0_26 = arith.constant 0 : index
    %54 = vector.load %arg9[%c0_25, %c0_26] : memref<8x1xf32, #tpu.memory_space<vmem>>, vector<8x1xf32>
    %cst_27 = arith.constant dense<0.000000e+00> : vector<8xf32>
    %55 = vector.multi_reduction <add>, %52, %cst_27 [1] : vector<8x256xf32> to vector<8xf32>
    %56 = vector.shape_cast %55 : vector<8xf32> to vector<8x1xf32>
    %cst_28 = arith.constant 3.906250e-03 : f32
    %57 = vector.broadcast %cst_28 : f32 to vector<8x1xf32>
    %58 = arith.mulf %56, %57 : vector<8x1xf32>
    %59 = vector.broadcast %58 : vector<8x1xf32> to vector<8x256xf32>
    %60 = arith.subf %52, %59 : vector<8x256xf32>
    %61 = arith.mulf %60, %60 : vector<8x256xf32>
    %cst_29 = arith.constant dense<0.000000e+00> : vector<8xf32>
    %62 = vector.multi_reduction <add>, %61, %cst_29 [1] : vector<8x256xf32> to vector<8xf32>
    %63 = vector.shape_cast %62 : vector<8xf32> to vector<8x1xf32>
    %cst_30 = arith.constant 3.906250e-03 : f32
    %64 = vector.broadcast %cst_30 : f32 to vector<8x1xf32>
    %65 = arith.mulf %63, %64 : vector<8x1xf32>
    %cst_31 = arith.constant 9.99999974E-6 : f32
    %66 = vector.broadcast %cst_31 : f32 to vector<8x1xf32>
    %67 = arith.addf %65, %66 : vector<8x1xf32>
    %68 = math.rsqrt %67 : vector<8x1xf32>
    %69 = arith.mulf %53, %68 : vector<8x1xf32>
    %70 = vector.broadcast %69 : vector<8x1xf32> to vector<8x256xf32>
    %71 = arith.mulf %52, %70 : vector<8x256xf32>
    %72 = arith.mulf %58, %69 : vector<8x1xf32>
    %73 = arith.subf %54, %72 : vector<8x1xf32>
    %74 = vector.broadcast %73 : vector<8x1xf32> to vector<8x256xf32>
    %75 = arith.addf %71, %74 : vector<8x256xf32>
    %76 = arith.addf %75, %17 : vector<8x256xf32>
    %cst_32 = arith.constant 0.000000e+00 : f32
    %77 = vector.broadcast %cst_32 : f32 to vector<8x256xf32>
    %78 = arith.maximumf %76, %77 : vector<8x256xf32>
    %c0_33 = arith.constant 0 : index
    %c0_34 = arith.constant 0 : index
    %79 = vector.load %arg10[%c0_33, %c0_34] : memref<8x256xf32, #tpu.memory_space<vmem>>, vector<8x256xf32>
    tpu.vector_store %arg10[%c0_33, %c0_34], %78 {strides = array<i32>} : memref<8x256xf32, #tpu.memory_space<vmem>>, vector<8x256xf32>,
    return
  }
  func.func @transform_0(%arg0: i32) -> (i32, i32) {
    %c0_i32 = arith.constant 0 : i32
    %c0_i32_0 = arith.constant 0 : i32
    %c0_i32_1 = arith.constant 0 : i32
    return %c0_i32, %c0_i32_0 : i32, i32
  }
  func.func @transform_1(%arg0: i32) -> (i32, i32) {
    %c0_i32 = arith.constant 0 : i32
    %c0_i32_0 = arith.constant 0 : i32
    %c0_i32_1 = arith.constant 0 : i32
    return %c0_i32, %c0_i32_0 : i32, i32
  }
  func.func @transform_2(%arg0: i32) -> (i32, i32) {
    %c0_i32 = arith.constant 0 : i32
    %c0_i32_0 = arith.constant 0 : i32
    %c0_i32_1 = arith.constant 0 : i32
    return %c0_i32, %c0_i32_0 : i32, i32
  }
  func.func @transform_3(%arg0: i32) -> (i32, i32) {
    %c0_i32 = arith.constant 0 : i32
    %c0_i32_0 = arith.constant 0 : i32
    %c0_i32_1 = arith.constant 0 : i32
    return %c0_i32, %c0_i32_0 : i32, i32
  }
  func.func @transform_4(%arg0: i32) -> (i32, i32) {
    %c0_i32 = arith.constant 0 : i32
    %c0_i32_0 = arith.constant 0 : i32
    %c0_i32_1 = arith.constant 0 : i32
    return %c0_i32, %c0_i32_0 : i32, i32
  }
  func.func @transform_5(%arg0: i32) -> (i32, i32) {
    %c0_i32 = arith.constant 0 : i32
    %c0_i32_0 = arith.constant 0 : i32
    %c0_i32_1 = arith.constant 0 : i32
    return %c0_i32, %c0_i32_0 : i32, i32
  }
  func.func @transform_6(%arg0: i32) -> (i32, i32) {
    %c0_i32 = arith.constant 0 : i32
    %c0_i32_0 = arith.constant 0 : i32
    %c0_i32_1 = arith.constant 0 : i32
    return %c0_i32, %c0_i32_0 : i32, i32
  }
  func.func @transform_7(%arg0: i32) -> (i32, i32) {
    %c0_i32 = arith.constant 0 : i32
    %c0_i32_0 = arith.constant 0 : i32
    %c0_i32_1 = arith.constant 0 : i32
    return %c0_i32, %c0_i32_0 : i32, i32
  }
  func.func @transform_8(%arg0: i32) -> (i32, i32) {
    %c0_i32 = arith.constant 0 : i32
    %c0_i32_0 = arith.constant 0 : i32
    %c0_i32_1 = arith.constant 0 : i32
    return %c0_i32, %c0_i32_0 : i32, i32
  }
  func.func @transform_9(%arg0: i32) -> (i32, i32) {
    %c0_i32 = arith.constant 0 : i32
    %c0_i32_0 = arith.constant 0 : i32
    %c0_i32_1 = arith.constant 0 : i32
    return %c0_i32, %c0_i32_0 : i32, i32
  }
}

</mosaic_0001>

<bundles_post_ra>
// kernel: residual_pallas.1
= control target key start
LH: loop header
LB: loop body
LE: loop exit
PB: predicated region body
PF: predicated region fallthrough
CT: control target
= control target key end

     0   :  { %s352_s11 = smov 1   ;;  %s353_s12 = smov 127   ;;  %v354_v2 = vmov 0   ;;  %s492_s0 = inlined_call_operand.vmem [shape: f32[8,256], index: 0, kind: input, shape index: {}]   ;;  %s493_s1 = inlined_call_operand.vmem [shape: f32[2,256], index: 1, kind: input, shape index: {}]   ;;  %s494_s2 = inlined_call_operand.vmem [shape: bf16[16,24], index: 2, kind: input, shape index: {}]   ;;  %s495_s3 = inlined_call_operand.vmem [shape: bf16[8,24], index: 3, kind: input, shape index: {}]   ;;  %s496_s4 = inlined_call_operand.vmem [shape: f32[8,1], index: 4, kind: input, shape index: {}]   ;;  %s497_s5 = inlined_call_operand.vmem [shape: f32[8,1], index: 5, kind: input, shape index: {}]   ;;  %s498_s6 = inlined_call_operand.vmem [shape: f32[8,1], index: 6, kind: input, shape index: {}]   ;;  %s499_s7 = inlined_call_operand.vmem [shape: f32[8,1], index: 7, kind: input, shape index: {}]   ;;  %s500_s8 = inlined_call_operand.vmem [shape: f32[8,1], index: 8, kind: input, shape index: {}]   ;;  %s501_s9 = inlined_call_operand.hbm [shape: f32[8,256], index: 9, kind: output, shape index: {}]  }
   0x1   :  { %v37_v0 = vld [vmem:[%s492_s0] sm:$0xff]  ;;  %v38_v1 = vld [vmem:[%s492_s0 + $0x8] sm:$0xff]  ;;  %135 = vmatprep.mubr.bf16.mxu0 %v354_v2  ;;  %323 = vset.pattern.permute.xlu0 %v354_v2 }
   0x2   :  { %41 = vrot.lane.b32.xlu1 %v37_v0, %s352_s11  ;;  %63 = vrot.lane.b32.xlu0 %v37_v0, %s353_s12 }
   0x3   :  { %14 = vsyncpa [#allocation3], 0  ;;  %324 = vset.pattern.permute.xlu1 %v354_v2  ;;  %251 = vmatprep.mubr.bf16.mxu1 %v354_v2  ;;  %v45_v3 = vlaneseq  ;;  %v34_v8 = vld [vmem:[%s493_s1] ss:$2 sm:$0x3]  ;;  %vm96_vm2 = vcmask 1043456  }
   0x4   :  { %v313_v9 = vld [vmem:[%s493_s1 + $0x1] ss:$2 sm:$0x3]  ;;  %vm92_vm3 = vcmask 195584  }
   0x5   :  { %v52_v4 = vshrl.u32 %v45_v3, 7  ;;  %v416_v5 = vand.u32 127, %v45_v3  ;;  %v325_v31 = vld [vmem:[%s494_s2] sm:$0xff]  }
   0x6   :  { %43 = vrot.lane.b32.xlu1 %v38_v1, %s352_s11  ;;  %65 = vrot.lane.b32.xlu0 %v38_v1, %s353_s12  ;;  %v154_v45 = vld [vmem:[%s497_s5] sm:$0xff] }
   0x7   :  { %v53_v6 = vsub.s32 0, %v52_v4  ;;  %v57_v7 = vsub.s32 1, %v52_v4  ;;  %vm47_vm0 = vcmp.lt.s32.totalorder %v416_v5, 1  ;;  %vm67_vm1 = vcmp.lt.s32.totalorder %v416_v5, 127  ;;  %v155_v48 = vld [vmem:[%s498_s6] sm:$0xff] }
   0x9   :  { %v425_v12 = vrot.slane %v34_v8, %v57_v7  ;;  %v428_v13 = vrot.slane %v313_v9, %v53_v6  ;;  %v430_v14 = vrot.slane %v313_v9, %v57_v7  ;;  %v434_v18 = vrot.slane %v34_v8, %v53_v6 }
  0x74   :  { %v42_v10 = vpop.permute.xlu1 %41  ;;  %v64_v11 = vpop.permute.xlu0 %63 }
  0x78   :  { %v44_v15 = vpop.permute.xlu1 %43  ;;  %v66_v16 = vpop.permute.xlu0 %65 }
  0x79   :  { %v48_v17 = vsel %vm47_vm0, %v42_v10, %v44_v15  ;;  %v68_v19 = vsel %vm67_vm1, %v64_v11, %v66_v16  ;;  %v69_v20 = vsel %vm67_vm1, %v66_v16, %v64_v11  ;;  %v49_v21 = vsel %vm47_vm0, %v44_v15, %v42_v10 }
  0x7a   :  { %v62_v22 = vmul.f32 %v425_v12, %v48_v17  ;;  %v81_v23 = vmul.f32 %v428_v13, %v68_v19  ;;  %v82_v24 = vmul.f32 %v430_v14, %v69_v20  ;;  %v61_v27 = vmul.f32 %v434_v18, %v49_v21 }
  0x7c   :  { %v86_v25 = vpack.c.bf16 %v82_v24, %v82_v24  ;;  %v85_v26 = vpack.c.bf16 %v81_v23, %v81_v23  ;;  %v84_v29 = vpack.c.bf16 %v38_v1, %v62_v22  ;;  %v83_v30 = vpack.c.bf16 %v37_v0, %v61_v27 }
  0x7e   :  { %315 = vmatprep.subr.msk.bf16.mxu0 %vm96_vm2, %v86_v25  ;;  %v98_v28 = vsel %vm96_vm2, %v85_v26, 0  ;;  %v146_v25 = vld [vmem:[%s496_s4] sm:$0xff]  ;;  %s355_s4 = smov [#allocation2]  }
  0x7f   :  { %116 = vmatpush1.bf16.msra.mxu0 %v98_v28 }
  0x80   :  { %117 = vmatprep.subr.bf16.mxu0 %v84_v29  ;;  %v260_v29 = vld [vmem:[%s499_s7] sm:$0xff]  ;;  %s305_s7 = sshll.u32 %s355_s4, 4  ;;  %s306_s7 = int_to_ptr.vmem [resolvable:$true] %s305_s7 }
  0x81   :  { %p335_p1 = scmp.lt.s32.totalorder %s306_s7, %s306_s7 }
  0x83   :  { %118 = vmatpush1.bf16.msra.mxu0 %v83_v30 }
  0x86   :  { %316 = vmatmul.mubr.msk.bf16.vlgmr.msra.gmra.mxu0 %vm92_vm3, %v325_v31 }
 0x146   :  { %v137_v32 = vpop.f32.mrf.mxu0 }
 0x148   :  { %v139_v33 = vpop.f32.mrf.mxu0 }
 0x149   :  { %v156_v34 = vadd.f32 %v139_v33, %v137_v32 }
 0x14b   :  { %157 = vadd.xlane.f32.xlu0 %v156_v34 }
 0x1d4   :  { %v158_v35 = vpop.xlane.xlu0 %157 }
 0x1d5   :  { %v159_v36 = vmul.f32 0.00390625, %v158_v35  ;;  %v141_v35 = vpop.f32.mrf.mxu0 }
 0x1d7   :  { %v160_v37 = vsub.f32 %v137_v32, %v159_v36  ;;  %v161_v38 = vsub.f32 %v139_v33, %v159_v36 }
 0x1d9   :  { %v162_v39 = vmul.f32 %v160_v37, %v160_v37  ;;  %v163_v40 = vmul.f32 %v161_v38, %v161_v38 }
 0x1db   :  { %v164_v41 = vadd.f32 %v163_v40, %v162_v39  ;;  %v143_v40 = vpop.f32.mrf.mxu0 }
 0x1dd   :  { %165 = vadd.xlane.f32.xlu1 %v164_v41 }
 0x266   :  { %v166_v42 = vpop.xlane.xlu1 %165 }
 0x267   :  { %v167_v43 = vmul.f32 0.00390625, %v166_v42 }
 0x269   :  { %v168_v44 = vadd.f32 1e-05, %v167_v43 }
 0x26b   :  { %326 = vrsqrt.f32 %v168_v44 }
 0x278   :  { %v327_v46 = vpop.eup %326 }
 0x279   :  { %v170_v47 = vmul.f32 %v327_v46, %v154_v45 }
 0x27b   :  { %173 = vperm.xlu0 %323, %v170_v47   ;;  %v178_v49 = vmul.f32 %v170_v47, %v159_v36 }
 0x27d   :  { %v179_v50 = vsub.f32 %v155_v48, %v178_v49 }
 0x27f   :  { %182 = vperm.xlu1 %324, %v179_v50  }
 0x2f6   :  { %v174_v51 = vpop.permute.xlu0 %173 }
 0x2f7   :  { %v176_v52 = vmul.f32 %v174_v51, %v137_v32  ;;  %v177_v54 = vmul.f32 %v174_v51, %v139_v33  ;;  %v261_v32 = vld [vmem:[%s500_s8] sm:$0xff]  ;;  %s330_s8 = scalar_lea.vmem %s306_s7, 256 }
 0x2f8   :  { %p331_p0 = scmp.ne.s32.totalorder %s306_s7, %s330_s8  ;;  %p336_p2 = scmp.lt.s32.totalorder %s330_s8, %s330_s8 }
 0x2fa   :  { %v183_v53 = vpop.permute.xlu1 %182  ;;  %p337_p3 = por %p336_p2, %p335_p1 }
 0x2fb   :  { %v185_v55 = vadd.f32 %v183_v53, %v176_v52  ;;  %v186_v56 = vadd.f32 %v183_v53, %v177_v54 }
 0x2fc   :  { %p338_p4 = pnand %p337_p3, %p331_p0 }
 0x2fd   :  { %v187_v57 = vmax.f32 %v185_v55, 0.0  ;;  %v188_v58 = vmax.f32 %v186_v56, 0.0 }
 0x2ff   :  { %198 = vrot.lane.b32.xlu1 %v187_v57, %s353_s12 }
 0x303   :  { %200 = vrot.lane.b32.xlu1 %v188_v58, %s353_s12 }
 0x307   :  { %190 = vrot.lane.b32.xlu1 %v187_v57, %s352_s11 }
 0x30b   :  { %192 = vrot.lane.b32.xlu1 %v188_v58, %s352_s11 }
 0x371   :  { %v199_v59 = vpop.permute.xlu1 %198 }
 0x375   :  { %v201_v60 = vpop.permute.xlu1 %200 }
 0x376   :  { %v202_v61 = vsel %vm67_vm1, %v199_v59, %v201_v60  ;;  %v203_v62 = vsel %vm67_vm1, %v201_v60, %v199_v59 }
 0x377   :  { %v204_v63 = vmul.f32 %v202_v61, %v428_v13  ;;  %v205_v0 = vmul.f32 %v203_v62, %v430_v14  ;;  %v189_v14 = vld [vmem:[%s495_s3] sm:$0xf] }
 0x379   :  { %v191_v1 = vpop.permute.xlu1 %190  ;;  %v209_v2 = vpack.c.bf16 %v205_v0, %v205_v0  ;;  %v208_v3 = vpack.c.bf16 %v204_v63, %v204_v63 }
 0x37b   :  { %317 = vmatprep.subr.msk.bf16.mxu1 %vm96_vm2, %v209_v2  ;;  %v214_v4 = vsel %vm96_vm2, %v208_v3, 0 }
 0x37c   :  { %232 = vmatpush1.bf16.msra.mxu1 %v214_v4 }
 0x37d   :  { %v193_v6 = vpop.permute.xlu1 %192 }
 0x37e   :  { %v194_v7 = vsel %vm47_vm0, %v191_v1, %v193_v6  ;;  %v195_v8 = vsel %vm47_vm0, %v193_v6, %v191_v1 }
 0x37f   :  { %v196_v9 = vmul.f32 %v195_v8, %v434_v18  ;;  %v197_v10 = vmul.f32 %v194_v7, %v425_v12 }
 0x381   :  { %v207_v11 = vpack.c.bf16 %v188_v58, %v197_v10  ;;  %v206_v13 = vpack.c.bf16 %v187_v57, %v196_v9 }
 0x383   :  { %233 = vmatprep.subr.bf16.mxu1 %v207_v11 }
 0x384   :  { %234 = vmatpush1.bf16.msra.mxu1 %v206_v13 }
 0x387   :  { %318 = vmatmul.mubr.msk.bf16.vlgmr.msra.gmra.mxu1 %vm92_vm3, %v189_v14 }
 0x447   :  { %v253_v15 = vpop.f32.mrf.mxu1 }
 0x449   :  { %v255_v16 = vpop.f32.mrf.mxu1 }
 0x44a   :  { %v262_v17 = vadd.f32 %v255_v16, %v253_v15 }
 0x44b   :  { %v257_v19 = vpop.f32.mrf.mxu1 }
 0x44c   :  { %263 = vadd.xlane.f32.xlu1 %v262_v17 }
 0x44d   :  { %v258_v5 = vpop.f32.mrf.mxu1 }
 0x4d5   :  { %v264_v20 = vpop.xlane.xlu1 %263 }
 0x4d6   :  { %v265_v18 = vmul.f32 0.00390625, %v264_v20 }
 0x4d8   :  { %v266_v21 = vsub.f32 %v253_v15, %v265_v18  ;;  %v267_v12 = vsub.f32 %v255_v16, %v265_v18 }
 0x4da   :  { %v268_v22 = vmul.f32 %v266_v21, %v266_v21  ;;  %v269_v23 = vmul.f32 %v267_v12, %v267_v12 }
 0x4dc   :  { %v270_v24 = vadd.f32 %v269_v23, %v268_v22 }
 0x4de   :  { %271 = vadd.xlane.f32.xlu0 %v270_v24 }
 0x4f4   :  { %149 = vperm.xlu0 %323, %v146_v25  }
 0x567   :  { %v272_v26 = vpop.xlane.xlu0 %271 }
 0x568   :  { %v273_v27 = vmul.f32 0.00390625, %v272_v26 }
 0x56a   :  { %v274_v28 = vadd.f32 1e-05, %v273_v27 }
 0x56c   :  { %328 = vrsqrt.f32 %v274_v28 }
 0x56f   :  { %v150_v37 = vpop.permute.xlu0 %149 }
 0x570   :  { %v152_v42 = vadd.f32 %v150_v37, %v141_v35  ;;  %v153_v43 = vadd.f32 %v150_v37, %v143_v40 }
 0x579   :  { %v329_v30 = vpop.eup %328 }
 0x57a   :  { %v276_v31 = vmul.f32 %v329_v30, %v260_v29 }
 0x57c   :  { %279 = vperm.xlu1 %324, %v276_v31   ;;  %v284_v33 = vmul.f32 %v276_v31, %v265_v18 }
 0x57e   :  { %v285_v34 = vsub.f32 %v261_v32, %v284_v33 }
 0x580   :  { %288 = vperm.xlu1 %324, %v285_v34  }
 0x5f7   :  { %v280_v36 = vpop.permute.xlu1 %279 }
 0x5f8   :  { %v282_v38 = vmul.f32 %v280_v36, %v253_v15  ;;  %v283_v39 = vmul.f32 %v280_v36, %v255_v16 }
 0x5fb   :  { %v289_v41 = vpop.permute.xlu1 %288 }
 0x5fc   :  { %v291_v44 = vadd.f32 %v289_v41, %v282_v38  ;;  %v292_v45 = vadd.f32 %v289_v41, %v283_v39 }
 0x5fe   :  { %v293_v46 = vadd.f32 %v291_v44, %v152_v42  ;;  %v294_v47 = vadd.f32 %v292_v45, %v153_v43 }
 0x600   :  { %v295_v48 = vmax.f32 %v293_v46, 0.0  ;;  %v296_v49 = vmax.f32 %v294_v47, 0.0 }
 0x602   :  { %297 = vst [vmem:[#allocation2] sm:$0xff] %v295_v48  ;;  %298 = vst [vmem:[#allocation2 + $0x8] sm:$0xff] %v296_v49 }
 0x603   :  { %341 = shalt.err (!%p338_p4)
}
 0x604   :  { %308 = dma.vmem_to_hbm [thread:$0]  %s306_s7, 256, %s501_s9, [#allocation3]  }
 0x605   :  { %350 = dma.done.wait [#allocation3], 256  }
 0x606   :  { %351 = vsyncadd [#allocation3], 4294967040 }
 0x607   :  { %312 = vsyncpa [#allocation3], 1 }

</bundles_post_ra>
